<compile_context>
chip_gen: v7x
topology: tpu7x:2x2x1
jax: 0.10.0
libtpu: 0.0.40
codegen_flags: <defaults>
</compile_context>

<pallas_src>
import jax
import jax.numpy as jnp
from jax.experimental import pallas as pl
from jax.experimental.pallas import tpu as pltpu


def _cdiv(a: int, b: int) -> int:
    return -(-a // b)


_MAX_UNROLLED_CHANNELS = 64


def _make_shuffle_kernel(num_channels: int, num_chunks: int, chunk_rows: int,
                         last_rows: int, ring: int):
    """DMA-issue kernel: output channel i <- input channel perm[i], chunked along H."""

    def kernel(perm_ref, x_hbm, o_hbm, sem):
        # perm_ref: (C,) int32 in SMEM; x_hbm/o_hbm: (C, H, ...) refs in HBM.
        # Hoist every SMEM scalar read above the first DMA wait (wait breaks
        # sst->sld forwarding, stalling later scalar loads).
        perm_vals = [perm_ref[i] for i in range(num_channels)]

        pending = [None] * ring
        slot = 0
        for i in range(num_channels):            # static unroll (C is small)
            src_ch = perm_vals[i]
            for c in range(num_chunks):          # static unroll along H
                rows = last_rows if c == num_chunks - 1 else chunk_rows
                r0 = c * chunk_rows              # static, 8-row aligned offset
                if pending[slot] is not None:
                    # Semaphore-slot reuse: the copy previously issued on this
                    # slot (its own exact descriptor) must land before re-arm.
                    pending[slot].wait()
                src = x_hbm.at[pl.ds(src_ch, 1), pl.ds(r0, rows)]
                dst = o_hbm.at[pl.ds(i, 1), pl.ds(r0, rows)]
                cp = pltpu.make_async_copy(src, dst, sem.at[slot])
                cp.start()
                pending[slot] = cp
                slot = (slot + 1) % ring
        # Drain all outstanding copies before the kernel returns.
        for cp in pending:
            if cp is not None:
                cp.wait()

    return kernel


def channel_shuffle(img: jax.Array, key: jax.Array, *,
                    min_pallas_bytes: int = 1 << 20) -> jax.Array:
    """Randomly shuffle the channel (axis 0) order of a CHW image."""
    C = img.shape[0]

    # torch.rand(C).argsort() -> a uniformly random permutation of [0, C).
    perm = jnp.argsort(jax.random.uniform(key, (C,))).astype(jnp.int32)

    total_bytes = img.size * img.dtype.itemsize
    if img.ndim < 2 or C > _MAX_UNROLLED_CHANNELS or total_bytes < min_pallas_bytes:
        # Launch overhead would dominate (small image), or the static per-DMA
        # unroll would bloat (very large C) — let XLA do the fused gather.
        # TODO(synk): rolled lax.fori_loop DMA variant for C > 64 feature maps.
        return img[perm]

    H = img.shape[1]

    # Split each channel into sublane-aligned chunks along H so that ~16 DMAs
    # are in flight regardless of C (C=3 alone would not saturate HBM).
    target_inflight = 16
    if H >= 8:
        want = max(1, target_inflight // C)
        num_chunks = max(1, min(want, H // 8))
        chunk_rows = _cdiv(H, num_chunks)
        chunk_rows = ((chunk_rows + 7) // 8) * 8          # keep chunks 8-row aligned
        num_chunks = _cdiv(H, chunk_rows)
    else:
        num_chunks, chunk_rows = 1, H
    last_rows = H - (num_chunks - 1) * chunk_rows

    ring = min(C * num_chunks, target_inflight)

    # TODO(synk): on v7x, issue DMAs from both TensorCores (grid=(2,) parallel)
    # to fill more DMA queues when chasing the 3.2 TB/s roofline.
    return pl.pallas_call(
        _make_shuffle_kernel(C, num_chunks, chunk_rows, last_rows, ring),
        out_shape=jax.ShapeDtypeStruct(img.shape, img.dtype),
        in_specs=[
            pl.BlockSpec(memory_space=pltpu.MemorySpace.SMEM),   # perm
            pl.BlockSpec(memory_space=pl.ANY),                   # img stays in HBM
        ],
        out_specs=pl.BlockSpec(memory_space=pl.ANY),             # out stays in HBM
        scratch_shapes=[pltpu.SemaphoreType.DMA((ring,))],
    )(perm, img)


if __name__ == "__main__":
    key = jax.random.PRNGKey(0)
    k_img, k_perm = jax.random.split(key)

    C, H, W = 4, 32, 128
    img = jax.random.normal(k_img, (C, H, W), dtype=jnp.float32)

    # min_pallas_bytes=0 forces the Pallas path even at this small demo size.
    out = channel_shuffle(img, k_perm, min_pallas_bytes=0)
    out = jax.block_until_ready(out)

    # Reference check: same permutation, plain-JAX gather.
    perm = jnp.argsort(jax.random.uniform(k_perm, (C,)))
    ref = img[perm]
    assert out.shape == img.shape and out.dtype == img.dtype
    assert bool(jnp.all(out == ref))

    print("KERNEL_OK")
</pallas_src>

<mosaic_0001>
module attributes {stable_mosaic.version = 11 : i64} {
  func.func @kernel(%arg0: memref<4xi32, #tpu.memory_space<smem>>, %arg1: memref<4x32x128xf32, #tpu.memory_space<any>>, %arg2: memref<4x32x128xf32, #tpu.memory_space<any>>, %arg3: memref<16x!tpu.dma_semaphore, #tpu.memory_space<semaphore_mem>>) attributes {dimension_semantics = [], scalar_prefetch = 0 : i64, scratch_operands = 1 : i64, tpu.core_type = #tpu.core_type<tc>} {
    %c0 = arith.constant 0 : index
    %0 = memref.load %arg0[%c0] : memref<4xi32, #tpu.memory_space<smem>>
    %c1 = arith.constant 1 : index
    %1 = memref.load %arg0[%c1] : memref<4xi32, #tpu.memory_space<smem>>
    %c2 = arith.constant 2 : index
    %2 = memref.load %arg0[%c2] : memref<4xi32, #tpu.memory_space<smem>>
    %c3 = arith.constant 3 : index
    %3 = memref.load %arg0[%c3] : memref<4xi32, #tpu.memory_space<smem>>
    %c0_i32 = arith.constant 0 : i32
    %c0_i32_0 = arith.constant 0 : i32
    %c0_i32_1 = arith.constant 0 : i32
    %4 = tpu.memref_slice %arg1[%0, %c0_i32_0, %c0_i32_1] : memref<4x32x128xf32, #tpu.memory_space<any>> -> memref<1x8x128xf32, #tpu.memory_space<any>>
    %c0_i32_2 = arith.constant 0 : i32
    %c0_i32_3 = arith.constant 0 : i32
    %c0_i32_4 = arith.constant 0 : i32
    %5 = tpu.memref_slice %arg2[%c0_i32_2, %c0_i32_3, %c0_i32_4] : memref<4x32x128xf32, #tpu.memory_space<any>> -> memref<1x8x128xf32, #tpu.memory_space<any>>
    %6 = tpu.memref_slice %arg3[%c0_i32] : memref<16x!tpu.dma_semaphore, #tpu.memory_space<semaphore_mem>> -> memref<1x!tpu.dma_semaphore, #tpu.memory_space<semaphore_mem>>
    %7 = tpu.memref_squeeze %6 : memref<1x!tpu.dma_semaphore, #tpu.memory_space<semaphore_mem>> -> memref<!tpu.dma_semaphore, #tpu.memory_space<semaphore_mem>>
    tpu.enqueue_dma source(%4 : memref<1x8x128xf32, #tpu.memory_space<any>>) target(%5 : memref<1x8x128xf32, #tpu.memory_space<any>>) target_semaphore(%7 : memref<!tpu.dma_semaphore, #tpu.memory_space<semaphore_mem>>)
    %c1_i32 = arith.constant 1 : i32
    %c8_i32 = arith.constant 8 : i32
    %c0_i32_5 = arith.constant 0 : i32
    %8 = tpu.memref_slice %arg1[%0, %c8_i32, %c0_i32_5] : memref<4x32x128xf32, #tpu.memory_space<any>> -> memref<1x8x128xf32, #tpu.memory_space<any>>
    %c0_i32_6 = arith.constant 0 : i32
    %c8_i32_7 = arith.constant 8 : i32
    %c0_i32_8 = arith.constant 0 : i32
    %9 = tpu.memref_slice %arg2[%c0_i32_6, %c8_i32_7, %c0_i32_8] : memref<4x32x128xf32, #tpu.memory_space<any>> -> memref<1x8x128xf32, #tpu.memory_space<any>>
    %10 = tpu.memref_slice %arg3[%c1_i32] : memref<16x!tpu.dma_semaphore, #tpu.memory_space<semaphore_mem>> -> memref<1x!tpu.dma_semaphore, #tpu.memory_space<semaphore_mem>>
    %11 = tpu.memref_squeeze %10 : memref<1x!tpu.dma_semaphore, #tpu.memory_space<semaphore_mem>> -> memref<!tpu.dma_semaphore, #tpu.memory_space<semaphore_mem>>
    tpu.enqueue_dma source(%8 : memref<1x8x128xf32, #tpu.memory_space<any>>) target(%9 : memref<1x8x128xf32, #tpu.memory_space<any>>) target_semaphore(%11 : memref<!tpu.dma_semaphore, #tpu.memory_space<semaphore_mem>>)
    %c2_i32 = arith.constant 2 : i32
    %c16_i32 = arith.constant 16 : i32
    %c0_i32_9 = arith.constant 0 : i32
    %12 = tpu.memref_slice %arg1[%0, %c16_i32, %c0_i32_9] : memref<4x32x128xf32, #tpu.memory_space<any>> -> memref<1x8x128xf32, #tpu.memory_space<any>>
    %c0_i32_10 = arith.constant 0 : i32
    %c16_i32_11 = arith.constant 16 : i32
    %c0_i32_12 = arith.constant 0 : i32
    %13 = tpu.memref_slice %arg2[%c0_i32_10, %c16_i32_11, %c0_i32_12] : memref<4x32x128xf32, #tpu.memory_space<any>> -> memref<1x8x128xf32, #tpu.memory_space<any>>
    %14 = tpu.memref_slice %arg3[%c2_i32] : memref<16x!tpu.dma_semaphore, #tpu.memory_space<semaphore_mem>> -> memref<1x!tpu.dma_semaphore, #tpu.memory_space<semaphore_mem>>
    %15 = tpu.memref_squeeze %14 : memref<1x!tpu.dma_semaphore, #tpu.memory_space<semaphore_mem>> -> memref<!tpu.dma_semaphore, #tpu.memory_space<semaphore_mem>>
    tpu.enqueue_dma source(%12 : memref<1x8x128xf32, #tpu.memory_space<any>>) target(%13 : memref<1x8x128xf32, #tpu.memory_space<any>>) target_semaphore(%15 : memref<!tpu.dma_semaphore, #tpu.memory_space<semaphore_mem>>)
    %c3_i32 = arith.constant 3 : i32
    %c24_i32 = arith.constant 24 : i32
    %c0_i32_13 = arith.constant 0 : i32
    %16 = tpu.memref_slice %arg1[%0, %c24_i32, %c0_i32_13] : memref<4x32x128xf32, #tpu.memory_space<any>> -> memref<1x8x128xf32, #tpu.memory_space<any>>
    %c0_i32_14 = arith.constant 0 : i32
    %c24_i32_15 = arith.constant 24 : i32
    %c0_i32_16 = arith.constant 0 : i32
    %17 = tpu.memref_slice %arg2[%c0_i32_14, %c24_i32_15, %c0_i32_16] : memref<4x32x128xf32, #tpu.memory_space<any>> -> memref<1x8x128xf32, #tpu.memory_space<any>>
    %18 = tpu.memref_slice %arg3[%c3_i32] : memref<16x!tpu.dma_semaphore, #tpu.memory_space<semaphore_mem>> -> memref<1x!tpu.dma_semaphore, #tpu.memory_space<semaphore_mem>>
    %19 = tpu.memref_squeeze %18 : memref<1x!tpu.dma_semaphore, #tpu.memory_space<semaphore_mem>> -> memref<!tpu.dma_semaphore, #tpu.memory_space<semaphore_mem>>
    tpu.enqueue_dma source(%16 : memref<1x8x128xf32, #tpu.memory_space<any>>) target(%17 : memref<1x8x128xf32, #tpu.memory_space<any>>) target_semaphore(%19 : memref<!tpu.dma_semaphore, #tpu.memory_space<semaphore_mem>>)
    %c4_i32 = arith.constant 4 : i32
    %c0_i32_17 = arith.constant 0 : i32
    %c0_i32_18 = arith.constant 0 : i32
    %20 = tpu.memref_slice %arg1[%1, %c0_i32_17, %c0_i32_18] : memref<4x32x128xf32, #tpu.memory_space<any>> -> memref<1x8x128xf32, #tpu.memory_space<any>>
    %c1_i32_19 = arith.constant 1 : i32
    %c0_i32_20 = arith.constant 0 : i32
    %c0_i32_21 = arith.constant 0 : i32
    %21 = tpu.memref_slice %arg2[%c1_i32_19, %c0_i32_20, %c0_i32_21] : memref<4x32x128xf32, #tpu.memory_space<any>> -> memref<1x8x128xf32, #tpu.memory_space<any>>
    %22 = tpu.memref_slice %arg3[%c4_i32] : memref<16x!tpu.dma_semaphore, #tpu.memory_space<semaphore_mem>> -> memref<1x!tpu.dma_semaphore, #tpu.memory_space<semaphore_mem>>
    %23 = tpu.memref_squeeze %22 : memref<1x!tpu.dma_semaphore, #tpu.memory_space<semaphore_mem>> -> memref<!tpu.dma_semaphore, #tpu.memory_space<semaphore_mem>>
    tpu.enqueue_dma source(%20 : memref<1x8x128xf32, #tpu.memory_space<any>>) target(%21 : memref<1x8x128xf32, #tpu.memory_space<any>>) target_semaphore(%23 : memref<!tpu.dma_semaphore, #tpu.memory_space<semaphore_mem>>)
    %c5_i32 = arith.constant 5 : i32
    %c8_i32_22 = arith.constant 8 : i32
    %c0_i32_23 = arith.constant 0 : i32
    %24 = tpu.memref_slice %arg1[%1, %c8_i32_22, %c0_i32_23] : memref<4x32x128xf32, #tpu.memory_space<any>> -> memref<1x8x128xf32, #tpu.memory_space<any>>
    %c1_i32_24 = arith.constant 1 : i32
    %c8_i32_25 = arith.constant 8 : i32
    %c0_i32_26 = arith.constant 0 : i32
    %25 = tpu.memref_slice %arg2[%c1_i32_24, %c8_i32_25, %c0_i32_26] : memref<4x32x128xf32, #tpu.memory_space<any>> -> memref<1x8x128xf32, #tpu.memory_space<any>>
    %26 = tpu.memref_slice %arg3[%c5_i32] : memref<16x!tpu.dma_semaphore, #tpu.memory_space<semaphore_mem>> -> memref<1x!tpu.dma_semaphore, #tpu.memory_space<semaphore_mem>>
    %27 = tpu.memref_squeeze %26 : memref<1x!tpu.dma_semaphore, #tpu.memory_space<semaphore_mem>> -> memref<!tpu.dma_semaphore, #tpu.memory_space<semaphore_mem>>
    tpu.enqueue_dma source(%24 : memref<1x8x128xf32, #tpu.memory_space<any>>) target(%25 : memref<1x8x128xf32, #tpu.memory_space<any>>) target_semaphore(%27 : memref<!tpu.dma_semaphore, #tpu.memory_space<semaphore_mem>>)
    %c6_i32 = arith.constant 6 : i32
    %c16_i32_27 = arith.constant 16 : i32
    %c0_i32_28 = arith.constant 0 : i32
    %28 = tpu.memref_slice %arg1[%1, %c16_i32_27, %c0_i32_28] : memref<4x32x128xf32, #tpu.memory_space<any>> -> memref<1x8x128xf32, #tpu.memory_space<any>>
    %c1_i32_29 = arith.constant 1 : i32
    %c16_i32_30 = arith.constant 16 : i32
    %c0_i32_31 = arith.constant 0 : i32
    %29 = tpu.memref_slice %arg2[%c1_i32_29, %c16_i32_30, %c0_i32_31] : memref<4x32x128xf32, #tpu.memory_space<any>> -> memref<1x8x128xf32, #tpu.memory_space<any>>
    %30 = tpu.memref_slice %arg3[%c6_i32] : memref<16x!tpu.dma_semaphore, #tpu.memory_space<semaphore_mem>> -> memref<1x!tpu.dma_semaphore, #tpu.memory_space<semaphore_mem>>
    %31 = tpu.memref_squeeze %30 : memref<1x!tpu.dma_semaphore, #tpu.memory_space<semaphore_mem>> -> memref<!tpu.dma_semaphore, #tpu.memory_space<semaphore_mem>>
    tpu.enqueue_dma source(%28 : memref<1x8x128xf32, #tpu.memory_space<any>>) target(%29 : memref<1x8x128xf32, #tpu.memory_space<any>>) target_semaphore(%31 : memref<!tpu.dma_semaphore, #tpu.memory_space<semaphore_mem>>)
    %c7_i32 = arith.constant 7 : i32
    %c24_i32_32 = arith.constant 24 : i32
    %c0_i32_33 = arith.constant 0 : i32
    %32 = tpu.memref_slice %arg1[%1, %c24_i32_32, %c0_i32_33] : memref<4x32x128xf32, #tpu.memory_space<any>> -> memref<1x8x128xf32, #tpu.memory_space<any>>
    %c1_i32_34 = arith.constant 1 : i32
    %c24_i32_35 = arith.constant 24 : i32
    %c0_i32_36 = arith.constant 0 : i32
    %33 = tpu.memref_slice %arg2[%c1_i32_34, %c24_i32_35, %c0_i32_36] : memref<4x32x128xf32, #tpu.memory_space<any>> -> memref<1x8x128xf32, #tpu.memory_space<any>>
    %34 = tpu.memref_slice %arg3[%c7_i32] : memref<16x!tpu.dma_semaphore, #tpu.memory_space<semaphore_mem>> -> memref<1x!tpu.dma_semaphore, #tpu.memory_space<semaphore_mem>>
    %35 = tpu.memref_squeeze %34 : memref<1x!tpu.dma_semaphore, #tpu.memory_space<semaphore_mem>> -> memref<!tpu.dma_semaphore, #tpu.memory_space<semaphore_mem>>
    tpu.enqueue_dma source(%32 : memref<1x8x128xf32, #tpu.memory_space<any>>) target(%33 : memref<1x8x128xf32, #tpu.memory_space<any>>) target_semaphore(%35 : memref<!tpu.dma_semaphore, #tpu.memory_space<semaphore_mem>>)
    %c8_i32_37 = arith.constant 8 : i32
    %c0_i32_38 = arith.constant 0 : i32
    %c0_i32_39 = arith.constant 0 : i32
    %36 = tpu.memref_slice %arg1[%2, %c0_i32_38, %c0_i32_39] : memref<4x32x128xf32, #tpu.memory_space<any>> -> memref<1x8x128xf32, #tpu.memory_space<any>>
    %c2_i32_40 = arith.constant 2 : i32
    %c0_i32_41 = arith.constant 0 : i32
    %c0_i32_42 = arith.constant 0 : i32
    %37 = tpu.memref_slice %arg2[%c2_i32_40, %c0_i32_41, %c0_i32_42] : memref<4x32x128xf32, #tpu.memory_space<any>> -> memref<1x8x128xf32, #tpu.memory_space<any>>
    %38 = tpu.memref_slice %arg3[%c8_i32_37] : memref<16x!tpu.dma_semaphore, #tpu.memory_space<semaphore_mem>> -> memref<1x!tpu.dma_semaphore, #tpu.memory_space<semaphore_mem>>
    %39 = tpu.memref_squeeze %38 : memref<1x!tpu.dma_semaphore, #tpu.memory_space<semaphore_mem>> -> memref<!tpu.dma_semaphore, #tpu.memory_space<semaphore_mem>>
    tpu.enqueue_dma source(%36 : memref<1x8x128xf32, #tpu.memory_space<any>>) target(%37 : memref<1x8x128xf32, #tpu.memory_space<any>>) target_semaphore(%39 : memref<!tpu.dma_semaphore, #tpu.memory_space<semaphore_mem>>)
    %c9_i32 = arith.constant 9 : i32
    %c8_i32_43 = arith.constant 8 : i32
    %c0_i32_44 = arith.constant 0 : i32
    %40 = tpu.memref_slice %arg1[%2, %c8_i32_43, %c0_i32_44] : memref<4x32x128xf32, #tpu.memory_space<any>> -> memref<1x8x128xf32, #tpu.memory_space<any>>
    %c2_i32_45 = arith.constant 2 : i32
    %c8_i32_46 = arith.constant 8 : i32
    %c0_i32_47 = arith.constant 0 : i32
    %41 = tpu.memref_slice %arg2[%c2_i32_45, %c8_i32_46, %c0_i32_47] : memref<4x32x128xf32, #tpu.memory_space<any>> -> memref<1x8x128xf32, #tpu.memory_space<any>>
    %42 = tpu.memref_slice %arg3[%c9_i32] : memref<16x!tpu.dma_semaphore, #tpu.memory_space<semaphore_mem>> -> memref<1x!tpu.dma_semaphore, #tpu.memory_space<semaphore_mem>>
    %43 = tpu.memref_squeeze %42 : memref<1x!tpu.dma_semaphore, #tpu.memory_space<semaphore_mem>> -> memref<!tpu.dma_semaphore, #tpu.memory_space<semaphore_mem>>
    tpu.enqueue_dma source(%40 : memref<1x8x128xf32, #tpu.memory_space<any>>) target(%41 : memref<1x8x128xf32, #tpu.memory_space<any>>) target_semaphore(%43 : memref<!tpu.dma_semaphore, #tpu.memory_space<semaphore_mem>>)
    %c10_i32 = arith.constant 10 : i32
    %c16_i32_48 = arith.constant 16 : i32
    %c0_i32_49 = arith.constant 0 : i32
    %44 = tpu.memref_slice %arg1[%2, %c16_i32_48, %c0_i32_49] : memref<4x32x128xf32, #tpu.memory_space<any>> -> memref<1x8x128xf32, #tpu.memory_space<any>>
    %c2_i32_50 = arith.constant 2 : i32
    %c16_i32_51 = arith.constant 16 : i32
    %c0_i32_52 = arith.constant 0 : i32
    %45 = tpu.memref_slice %arg2[%c2_i32_50, %c16_i32_51, %c0_i32_52] : memref<4x32x128xf32, #tpu.memory_space<any>> -> memref<1x8x128xf32, #tpu.memory_space<any>>
    %46 = tpu.memref_slice %arg3[%c10_i32] : memref<16x!tpu.dma_semaphore, #tpu.memory_space<semaphore_mem>> -> memref<1x!tpu.dma_semaphore, #tpu.memory_space<semaphore_mem>>
    %47 = tpu.memref_squeeze %46 : memref<1x!tpu.dma_semaphore, #tpu.memory_space<semaphore_mem>> -> memref<!tpu.dma_semaphore, #tpu.memory_space<semaphore_mem>>
    tpu.enqueue_dma source(%44 : memref<1x8x128xf32, #tpu.memory_space<any>>) target(%45 : memref<1x8x128xf32, #tpu.memory_space<any>>) target_semaphore(%47 : memref<!tpu.dma_semaphore, #tpu.memory_space<semaphore_mem>>)
    %c11_i32 = arith.constant 11 : i32
    %c24_i32_53 = arith.constant 24 : i32
    %c0_i32_54 = arith.constant 0 : i32
    %48 = tpu.memref_slice %arg1[%2, %c24_i32_53, %c0_i32_54] : memref<4x32x128xf32, #tpu.memory_space<any>> -> memref<1x8x128xf32, #tpu.memory_space<any>>
    %c2_i32_55 = arith.constant 2 : i32
    %c24_i32_56 = arith.constant 24 : i32
    %c0_i32_57 = arith.constant 0 : i32
    %49 = tpu.memref_slice %arg2[%c2_i32_55, %c24_i32_56, %c0_i32_57] : memref<4x32x128xf32, #tpu.memory_space<any>> -> memref<1x8x128xf32, #tpu.memory_space<any>>
    %50 = tpu.memref_slice %arg3[%c11_i32] : memref<16x!tpu.dma_semaphore, #tpu.memory_space<semaphore_mem>> -> memref<1x!tpu.dma_semaphore, #tpu.memory_space<semaphore_mem>>
    %51 = tpu.memref_squeeze %50 : memref<1x!tpu.dma_semaphore, #tpu.memory_space<semaphore_mem>> -> memref<!tpu.dma_semaphore, #tpu.memory_space<semaphore_mem>>
    tpu.enqueue_dma source(%48 : memref<1x8x128xf32, #tpu.memory_space<any>>) target(%49 : memref<1x8x128xf32, #tpu.memory_space<any>>) target_semaphore(%51 : memref<!tpu.dma_semaphore, #tpu.memory_space<semaphore_mem>>)
    %c12_i32 = arith.constant 12 : i32
    %c0_i32_58 = arith.constant 0 : i32
    %c0_i32_59 = arith.constant 0 : i32
    %52 = tpu.memref_slice %arg1[%3, %c0_i32_58, %c0_i32_59] : memref<4x32x128xf32, #tpu.memory_space<any>> -> memref<1x8x128xf32, #tpu.memory_space<any>>
    %c3_i32_60 = arith.constant 3 : i32
    %c0_i32_61 = arith.constant 0 : i32
    %c0_i32_62 = arith.constant 0 : i32
    %53 = tpu.memref_slice %arg2[%c3_i32_60, %c0_i32_61, %c0_i32_62] : memref<4x32x128xf32, #tpu.memory_space<any>> -> memref<1x8x128xf32, #tpu.memory_space<any>>
    %54 = tpu.memref_slice %arg3[%c12_i32] : memref<16x!tpu.dma_semaphore, #tpu.memory_space<semaphore_mem>> -> memref<1x!tpu.dma_semaphore, #tpu.memory_space<semaphore_mem>>
    %55 = tpu.memref_squeeze %54 : memref<1x!tpu.dma_semaphore, #tpu.memory_space<semaphore_mem>> -> memref<!tpu.dma_semaphore, #tpu.memory_space<semaphore_mem>>
    tpu.enqueue_dma source(%52 : memref<1x8x128xf32, #tpu.memory_space<any>>) target(%53 : memref<1x8x128xf32, #tpu.memory_space<any>>) target_semaphore(%55 : memref<!tpu.dma_semaphore, #tpu.memory_space<semaphore_mem>>)
    %c13_i32 = arith.constant 13 : i32
    %c8_i32_63 = arith.constant 8 : i32
    %c0_i32_64 = arith.constant 0 : i32
    %56 = tpu.memref_slice %arg1[%3, %c8_i32_63, %c0_i32_64] : memref<4x32x128xf32, #tpu.memory_space<any>> -> memref<1x8x128xf32, #tpu.memory_space<any>>
    %c3_i32_65 = arith.constant 3 : i32
    %c8_i32_66 = arith.constant 8 : i32
    %c0_i32_67 = arith.constant 0 : i32
    %57 = tpu.memref_slice %arg2[%c3_i32_65, %c8_i32_66, %c0_i32_67] : memref<4x32x128xf32, #tpu.memory_space<any>> -> memref<1x8x128xf32, #tpu.memory_space<any>>
    %58 = tpu.memref_slice %arg3[%c13_i32] : memref<16x!tpu.dma_semaphore, #tpu.memory_space<semaphore_mem>> -> memref<1x!tpu.dma_semaphore, #tpu.memory_space<semaphore_mem>>
    %59 = tpu.memref_squeeze %58 : memref<1x!tpu.dma_semaphore, #tpu.memory_space<semaphore_mem>> -> memref<!tpu.dma_semaphore, #tpu.memory_space<semaphore_mem>>
    tpu.enqueue_dma source(%56 : memref<1x8x128xf32, #tpu.memory_space<any>>) target(%57 : memref<1x8x128xf32, #tpu.memory_space<any>>) target_semaphore(%59 : memref<!tpu.dma_semaphore, #tpu.memory_space<semaphore_mem>>)
    %c14_i32 = arith.constant 14 : i32
    %c16_i32_68 = arith.constant 16 : i32
    %c0_i32_69 = arith.constant 0 : i32
    %60 = tpu.memref_slice %arg1[%3, %c16_i32_68, %c0_i32_69] : memref<4x32x128xf32, #tpu.memory_space<any>> -> memref<1x8x128xf32, #tpu.memory_space<any>>
    %c3_i32_70 = arith.constant 3 : i32
    %c16_i32_71 = arith.constant 16 : i32
    %c0_i32_72 = arith.constant 0 : i32
    %61 = tpu.memref_slice %arg2[%c3_i32_70, %c16_i32_71, %c0_i32_72] : memref<4x32x128xf32, #tpu.memory_space<any>> -> memref<1x8x128xf32, #tpu.memory_space<any>>
    %62 = tpu.memref_slice %arg3[%c14_i32] : memref<16x!tpu.dma_semaphore, #tpu.memory_space<semaphore_mem>> -> memref<1x!tpu.dma_semaphore, #tpu.memory_space<semaphore_mem>>
    %63 = tpu.memref_squeeze %62 : memref<1x!tpu.dma_semaphore, #tpu.memory_space<semaphore_mem>> -> memref<!tpu.dma_semaphore, #tpu.memory_space<semaphore_mem>>
    tpu.enqueue_dma source(%60 : memref<1x8x128xf32, #tpu.memory_space<any>>) target(%61 : memref<1x8x128xf32, #tpu.memory_space<any>>) target_semaphore(%63 : memref<!tpu.dma_semaphore, #tpu.memory_space<semaphore_mem>>)
    %c15_i32 = arith.constant 15 : i32
    %c24_i32_73 = arith.constant 24 : i32
    %c0_i32_74 = arith.constant 0 : i32
    %64 = tpu.memref_slice %arg1[%3, %c24_i32_73, %c0_i32_74] : memref<4x32x128xf32, #tpu.memory_space<any>> -> memref<1x8x128xf32, #tpu.memory_space<any>>
    %c3_i32_75 = arith.constant 3 : i32
    %c24_i32_76 = arith.constant 24 : i32
    %c0_i32_77 = arith.constant 0 : i32
    %65 = tpu.memref_slice %arg2[%c3_i32_75, %c24_i32_76, %c0_i32_77] : memref<4x32x128xf32, #tpu.memory_space<any>> -> memref<1x8x128xf32, #tpu.memory_space<any>>
    %66 = tpu.memref_slice %arg3[%c15_i32] : memref<16x!tpu.dma_semaphore, #tpu.memory_space<semaphore_mem>> -> memref<1x!tpu.dma_semaphore, #tpu.memory_space<semaphore_mem>>
    %67 = tpu.memref_squeeze %66 : memref<1x!tpu.dma_semaphore, #tpu.memory_space<semaphore_mem>> -> memref<!tpu.dma_semaphore, #tpu.memory_space<semaphore_mem>>
    tpu.enqueue_dma source(%64 : memref<1x8x128xf32, #tpu.memory_space<any>>) target(%65 : memref<1x8x128xf32, #tpu.memory_space<any>>) target_semaphore(%67 : memref<!tpu.dma_semaphore, #tpu.memory_space<semaphore_mem>>)
    %c0_i32_78 = arith.constant 0 : i32
    %c0_i32_79 = arith.constant 0 : i32
    %c0_i32_80 = arith.constant 0 : i32
    %68 = tpu.memref_slice %arg1[%0, %c0_i32_79, %c0_i32_80] : memref<4x32x128xf32, #tpu.memory_space<any>> -> memref<1x8x128xf32, #tpu.memory_space<any>>
    %c0_i32_81 = arith.constant 0 : i32
    %c0_i32_82 = arith.constant 0 : i32
    %c0_i32_83 = arith.constant 0 : i32
    %69 = tpu.memref_slice %arg2[%c0_i32_81, %c0_i32_82, %c0_i32_83] : memref<4x32x128xf32, #tpu.memory_space<any>> -> memref<1x8x128xf32, #tpu.memory_space<any>>
    %70 = tpu.memref_slice %arg3[%c0_i32_78] : memref<16x!tpu.dma_semaphore, #tpu.memory_space<semaphore_mem>> -> memref<1x!tpu.dma_semaphore, #tpu.memory_space<semaphore_mem>>
    %71 = tpu.memref_squeeze %70 : memref<1x!tpu.dma_semaphore, #tpu.memory_space<semaphore_mem>> -> memref<!tpu.dma_semaphore, #tpu.memory_space<semaphore_mem>>
    tpu.wait_dma2 semaphore(%71 : memref<!tpu.dma_semaphore, #tpu.memory_space<semaphore_mem>>) src(%68 : memref<1x8x128xf32, #tpu.memory_space<any>>) dst(%69 : memref<1x8x128xf32, #tpu.memory_space<any>>)
    %c1_i32_84 = arith.constant 1 : i32
    %c8_i32_85 = arith.constant 8 : i32
    %c0_i32_86 = arith.constant 0 : i32
    %72 = tpu.memref_slice %arg1[%0, %c8_i32_85, %c0_i32_86] : memref<4x32x128xf32, #tpu.memory_space<any>> -> memref<1x8x128xf32, #tpu.memory_space<any>>
    %c0_i32_87 = arith.constant 0 : i32
    %c8_i32_88 = arith.constant 8 : i32
    %c0_i32_89 = arith.constant 0 : i32
    %73 = tpu.memref_slice %arg2[%c0_i32_87, %c8_i32_88, %c0_i32_89] : memref<4x32x128xf32, #tpu.memory_space<any>> -> memref<1x8x128xf32, #tpu.memory_space<any>>
    %74 = tpu.memref_slice %arg3[%c1_i32_84] : memref<16x!tpu.dma_semaphore, #tpu.memory_space<semaphore_mem>> -> memref<1x!tpu.dma_semaphore, #tpu.memory_space<semaphore_mem>>
    %75 = tpu.memref_squeeze %74 : memref<1x!tpu.dma_semaphore, #tpu.memory_space<semaphore_mem>> -> memref<!tpu.dma_semaphore, #tpu.memory_space<semaphore_mem>>
    tpu.wait_dma2 semaphore(%75 : memref<!tpu.dma_semaphore, #tpu.memory_space<semaphore_mem>>) src(%72 : memref<1x8x128xf32, #tpu.memory_space<any>>) dst(%73 : memref<1x8x128xf32, #tpu.memory_space<any>>)
    %c2_i32_90 = arith.constant 2 : i32
    %c16_i32_91 = arith.constant 16 : i32
    %c0_i32_92 = arith.constant 0 : i32
    %76 = tpu.memref_slice %arg1[%0, %c16_i32_91, %c0_i32_92] : memref<4x32x128xf32, #tpu.memory_space<any>> -> memref<1x8x128xf32, #tpu.memory_space<any>>
    %c0_i32_93 = arith.constant 0 : i32
    %c16_i32_94 = arith.constant 16 : i32
    %c0_i32_95 = arith.constant 0 : i32
    %77 = tpu.memref_slice %arg2[%c0_i32_93, %c16_i32_94, %c0_i32_95] : memref<4x32x128xf32, #tpu.memory_space<any>> -> memref<1x8x128xf32, #tpu.memory_space<any>>
    %78 = tpu.memref_slice %arg3[%c2_i32_90] : memref<16x!tpu.dma_semaphore, #tpu.memory_space<semaphore_mem>> -> memref<1x!tpu.dma_semaphore, #tpu.memory_space<semaphore_mem>>
    %79 = tpu.memref_squeeze %78 : memref<1x!tpu.dma_semaphore, #tpu.memory_space<semaphore_mem>> -> memref<!tpu.dma_semaphore, #tpu.memory_space<semaphore_mem>>
    tpu.wait_dma2 semaphore(%79 : memref<!tpu.dma_semaphore, #tpu.memory_space<semaphore_mem>>) src(%76 : memref<1x8x128xf32, #tpu.memory_space<any>>) dst(%77 : memref<1x8x128xf32, #tpu.memory_space<any>>)
    %c3_i32_96 = arith.constant 3 : i32
    %c24_i32_97 = arith.constant 24 : i32
    %c0_i32_98 = arith.constant 0 : i32
    %80 = tpu.memref_slice %arg1[%0, %c24_i32_97, %c0_i32_98] : memref<4x32x128xf32, #tpu.memory_space<any>> -> memref<1x8x128xf32, #tpu.memory_space<any>>
    %c0_i32_99 = arith.constant 0 : i32
    %c24_i32_100 = arith.constant 24 : i32
    %c0_i32_101 = arith.constant 0 : i32
    %81 = tpu.memref_slice %arg2[%c0_i32_99, %c24_i32_100, %c0_i32_101] : memref<4x32x128xf32, #tpu.memory_space<any>> -> memref<1x8x128xf32, #tpu.memory_space<any>>
    %82 = tpu.memref_slice %arg3[%c3_i32_96] : memref<16x!tpu.dma_semaphore, #tpu.memory_space<semaphore_mem>> -> memref<1x!tpu.dma_semaphore, #tpu.memory_space<semaphore_mem>>
    %83 = tpu.memref_squeeze %82 : memref<1x!tpu.dma_semaphore, #tpu.memory_space<semaphore_mem>> -> memref<!tpu.dma_semaphore, #tpu.memory_space<semaphore_mem>>
    tpu.wait_dma2 semaphore(%83 : memref<!tpu.dma_semaphore, #tpu.memory_space<semaphore_mem>>) src(%80 : memref<1x8x128xf32, #tpu.memory_space<any>>) dst(%81 : memref<1x8x128xf32, #tpu.memory_space<any>>)
    %c4_i32_102 = arith.constant 4 : i32
    %c0_i32_103 = arith.constant 0 : i32
    %c0_i32_104 = arith.constant 0 : i32
    %84 = tpu.memref_slice %arg1[%1, %c0_i32_103, %c0_i32_104] : memref<4x32x128xf32, #tpu.memory_space<any>> -> memref<1x8x128xf32, #tpu.memory_space<any>>
    %c1_i32_105 = arith.constant 1 : i32
    %c0_i32_106 = arith.constant 0 : i32
    %c0_i32_107 = arith.constant 0 : i32
    %85 = tpu.memref_slice %arg2[%c1_i32_105, %c0_i32_106, %c0_i32_107] : memref<4x32x128xf32, #tpu.memory_space<any>> -> memref<1x8x128xf32, #tpu.memory_space<any>>
    %86 = tpu.memref_slice %arg3[%c4_i32_102] : memref<16x!tpu.dma_semaphore, #tpu.memory_space<semaphore_mem>> -> memref<1x!tpu.dma_semaphore, #tpu.memory_space<semaphore_mem>>
    %87 = tpu.memref_squeeze %86 : memref<1x!tpu.dma_semaphore, #tpu.memory_space<semaphore_mem>> -> memref<!tpu.dma_semaphore, #tpu.memory_space<semaphore_mem>>
    tpu.wait_dma2 semaphore(%87 : memref<!tpu.dma_semaphore, #tpu.memory_space<semaphore_mem>>) src(%84 : memref<1x8x128xf32, #tpu.memory_space<any>>) dst(%85 : memref<1x8x128xf32, #tpu.memory_space<any>>)
    %c5_i32_108 = arith.constant 5 : i32
    %c8_i32_109 = arith.constant 8 : i32
    %c0_i32_110 = arith.constant 0 : i32
    %88 = tpu.memref_slice %arg1[%1, %c8_i32_109, %c0_i32_110] : memref<4x32x128xf32, #tpu.memory_space<any>> -> memref<1x8x128xf32, #tpu.memory_space<any>>
    %c1_i32_111 = arith.constant 1 : i32
    %c8_i32_112 = arith.constant 8 : i32
    %c0_i32_113 = arith.constant 0 : i32
    %89 = tpu.memref_slice %arg2[%c1_i32_111, %c8_i32_112, %c0_i32_113] : memref<4x32x128xf32, #tpu.memory_space<any>> -> memref<1x8x128xf32, #tpu.memory_space<any>>
    %90 = tpu.memref_slice %arg3[%c5_i32_108] : memref<16x!tpu.dma_semaphore, #tpu.memory_space<semaphore_mem>> -> memref<1x!tpu.dma_semaphore, #tpu.memory_space<semaphore_mem>>
    %91 = tpu.memref_squeeze %90 : memref<1x!tpu.dma_semaphore, #tpu.memory_space<semaphore_mem>> -> memref<!tpu.dma_semaphore, #tpu.memory_space<semaphore_mem>>
    tpu.wait_dma2 semaphore(%91 : memref<!tpu.dma_semaphore, #tpu.memory_space<semaphore_mem>>) src(%88 : memref<1x8x128xf32, #tpu.memory_space<any>>) dst(%89 : memref<1x8x128xf32, #tpu.memory_space<any>>)
    %c6_i32_114 = arith.constant 6 : i32
    %c16_i32_115 = arith.constant 16 : i32
    %c0_i32_116 = arith.constant 0 : i32
    %92 = tpu.memref_slice %arg1[%1, %c16_i32_115, %c0_i32_116] : memref<4x32x128xf32, #tpu.memory_space<any>> -> memref<1x8x128xf32, #tpu.memory_space<any>>
    %c1_i32_117 = arith.constant 1 : i32
    %c16_i32_118 = arith.constant 16 : i32
    %c0_i32_119 = arith.constant 0 : i32
    %93 = tpu.memref_slice %arg2[%c1_i32_117, %c16_i32_118, %c0_i32_119] : memref<4x32x128xf32, #tpu.memory_space<any>> -> memref<1x8x128xf32, #tpu.memory_space<any>>
    %94 = tpu.memref_slice %arg3[%c6_i32_114] : memref<16x!tpu.dma_semaphore, #tpu.memory_space<semaphore_mem>> -> memref<1x!tpu.dma_semaphore, #tpu.memory_space<semaphore_mem>>
    %95 = tpu.memref_squeeze %94 : memref<1x!tpu.dma_semaphore, #tpu.memory_space<semaphore_mem>> -> memref<!tpu.dma_semaphore, #tpu.memory_space<semaphore_mem>>
    tpu.wait_dma2 semaphore(%95 : memref<!tpu.dma_semaphore, #tpu.memory_space<semaphore_mem>>) src(%92 : memref<1x8x128xf32, #tpu.memory_space<any>>) dst(%93 : memref<1x8x128xf32, #tpu.memory_space<any>>)
    %c7_i32_120 = arith.constant 7 : i32
    %c24_i32_121 = arith.constant 24 : i32
    %c0_i32_122 = arith.constant 0 : i32
    %96 = tpu.memref_slice %arg1[%1, %c24_i32_121, %c0_i32_122] : memref<4x32x128xf32, #tpu.memory_space<any>> -> memref<1x8x128xf32, #tpu.memory_space<any>>
    %c1_i32_123 = arith.constant 1 : i32
    %c24_i32_124 = arith.constant 24 : i32
    %c0_i32_125 = arith.constant 0 : i32
    %97 = tpu.memref_slice %arg2[%c1_i32_123, %c24_i32_124, %c0_i32_125] : memref<4x32x128xf32, #tpu.memory_space<any>> -> memref<1x8x128xf32, #tpu.memory_space<any>>
    %98 = tpu.memref_slice %arg3[%c7_i32_120] : memref<16x!tpu.dma_semaphore, #tpu.memory_space<semaphore_mem>> -> memref<1x!tpu.dma_semaphore, #tpu.memory_space<semaphore_mem>>
    %99 = tpu.memref_squeeze %98 : memref<1x!tpu.dma_semaphore, #tpu.memory_space<semaphore_mem>> -> memref<!tpu.dma_semaphore, #tpu.memory_space<semaphore_mem>>
    tpu.wait_dma2 semaphore(%99 : memref<!tpu.dma_semaphore, #tpu.memory_space<semaphore_mem>>) src(%96 : memref<1x8x128xf32, #tpu.memory_space<any>>) dst(%97 : memref<1x8x128xf32, #tpu.memory_space<any>>)
    %c8_i32_126 = arith.constant 8 : i32
    %c0_i32_127 = arith.constant 0 : i32
    %c0_i32_128 = arith.constant 0 : i32
    %100 = tpu.memref_slice %arg1[%2, %c0_i32_127, %c0_i32_128] : memref<4x32x128xf32, #tpu.memory_space<any>> -> memref<1x8x128xf32, #tpu.memory_space<any>>
    %c2_i32_129 = arith.constant 2 : i32
    %c0_i32_130 = arith.constant 0 : i32
    %c0_i32_131 = arith.constant 0 : i32
    %101 = tpu.memref_slice %arg2[%c2_i32_129, %c0_i32_130, %c0_i32_131] : memref<4x32x128xf32, #tpu.memory_space<any>> -> memref<1x8x128xf32, #tpu.memory_space<any>>
    %102 = tpu.memref_slice %arg3[%c8_i32_126] : memref<16x!tpu.dma_semaphore, #tpu.memory_space<semaphore_mem>> -> memref<1x!tpu.dma_semaphore, #tpu.memory_space<semaphore_mem>>
    %103 = tpu.memref_squeeze %102 : memref<1x!tpu.dma_semaphore, #tpu.memory_space<semaphore_mem>> -> memref<!tpu.dma_semaphore, #tpu.memory_space<semaphore_mem>>
    tpu.wait_dma2 semaphore(%103 : memref<!tpu.dma_semaphore, #tpu.memory_space<semaphore_mem>>) src(%100 : memref<1x8x128xf32, #tpu.memory_space<any>>) dst(%101 : memref<1x8x128xf32, #tpu.memory_space<any>>)
    %c9_i32_132 = arith.constant 9 : i32
    %c8_i32_133 = arith.constant 8 : i32
    %c0_i32_134 = arith.constant 0 : i32
    %104 = tpu.memref_slice %arg1[%2, %c8_i32_133, %c0_i32_134] : memref<4x32x128xf32, #tpu.memory_space<any>> -> memref<1x8x128xf32, #tpu.memory_space<any>>
    %c2_i32_135 = arith.constant 2 : i32
    %c8_i32_136 = arith.constant 8 : i32
    %c0_i32_137 = arith.constant 0 : i32
    %105 = tpu.memref_slice %arg2[%c2_i32_135, %c8_i32_136, %c0_i32_137] : memref<4x32x128xf32, #tpu.memory_space<any>> -> memref<1x8x128xf32, #tpu.memory_space<any>>
    %106 = tpu.memref_slice %arg3[%c9_i32_132] : memref<16x!tpu.dma_semaphore, #tpu.memory_space<semaphore_mem>> -> memref<1x!tpu.dma_semaphore, #tpu.memory_space<semaphore_mem>>
    %107 = tpu.memref_squeeze %106 : memref<1x!tpu.dma_semaphore, #tpu.memory_space<semaphore_mem>> -> memref<!tpu.dma_semaphore, #tpu.memory_space<semaphore_mem>>
    tpu.wait_dma2 semaphore(%107 : memref<!tpu.dma_semaphore, #tpu.memory_space<semaphore_mem>>) src(%104 : memref<1x8x128xf32, #tpu.memory_space<any>>) dst(%105 : memref<1x8x128xf32, #tpu.memory_space<any>>)
    %c10_i32_138 = arith.constant 10 : i32
    %c16_i32_139 = arith.constant 16 : i32
    %c0_i32_140 = arith.constant 0 : i32
    %108 = tpu.memref_slice %arg1[%2, %c16_i32_139, %c0_i32_140] : memref<4x32x128xf32, #tpu.memory_space<any>> -> memref<1x8x128xf32, #tpu.memory_space<any>>
    %c2_i32_141 = arith.constant 2 : i32
    %c16_i32_142 = arith.constant 16 : i32
    %c0_i32_143 = arith.constant 0 : i32
    %109 = tpu.memref_slice %arg2[%c2_i32_141, %c16_i32_142, %c0_i32_143] : memref<4x32x128xf32, #tpu.memory_space<any>> -> memref<1x8x128xf32, #tpu.memory_space<any>>
    %110 = tpu.memref_slice %arg3[%c10_i32_138] : memref<16x!tpu.dma_semaphore, #tpu.memory_space<semaphore_mem>> -> memref<1x!tpu.dma_semaphore, #tpu.memory_space<semaphore_mem>>
    %111 = tpu.memref_squeeze %110 : memref<1x!tpu.dma_semaphore, #tpu.memory_space<semaphore_mem>> -> memref<!tpu.dma_semaphore, #tpu.memory_space<semaphore_mem>>
    tpu.wait_dma2 semaphore(%111 : memref<!tpu.dma_semaphore, #tpu.memory_space<semaphore_mem>>) src(%108 : memref<1x8x128xf32, #tpu.memory_space<any>>) dst(%109 : memref<1x8x128xf32, #tpu.memory_space<any>>)
    %c11_i32_144 = arith.constant 11 : i32
    %c24_i32_145 = arith.constant 24 : i32
    %c0_i32_146 = arith.constant 0 : i32
    %112 = tpu.memref_slice %arg1[%2, %c24_i32_145, %c0_i32_146] : memref<4x32x128xf32, #tpu.memory_space<any>> -> memref<1x8x128xf32, #tpu.memory_space<any>>
    %c2_i32_147 = arith.constant 2 : i32
    %c24_i32_148 = arith.constant 24 : i32
    %c0_i32_149 = arith.constant 0 : i32
    %113 = tpu.memref_slice %arg2[%c2_i32_147, %c24_i32_148, %c0_i32_149] : memref<4x32x128xf32, #tpu.memory_space<any>> -> memref<1x8x128xf32, #tpu.memory_space<any>>
    %114 = tpu.memref_slice %arg3[%c11_i32_144] : memref<16x!tpu.dma_semaphore, #tpu.memory_space<semaphore_mem>> -> memref<1x!tpu.dma_semaphore, #tpu.memory_space<semaphore_mem>>
    %115 = tpu.memref_squeeze %114 : memref<1x!tpu.dma_semaphore, #tpu.memory_space<semaphore_mem>> -> memref<!tpu.dma_semaphore, #tpu.memory_space<semaphore_mem>>
    tpu.wait_dma2 semaphore(%115 : memref<!tpu.dma_semaphore, #tpu.memory_space<semaphore_mem>>) src(%112 : memref<1x8x128xf32, #tpu.memory_space<any>>) dst(%113 : memref<1x8x128xf32, #tpu.memory_space<any>>)
    %c12_i32_150 = arith.constant 12 : i32
    %c0_i32_151 = arith.constant 0 : i32
    %c0_i32_152 = arith.constant 0 : i32
    %116 = tpu.memref_slice %arg1[%3, %c0_i32_151, %c0_i32_152] : memref<4x32x128xf32, #tpu.memory_space<any>> -> memref<1x8x128xf32, #tpu.memory_space<any>>
    %c3_i32_153 = arith.constant 3 : i32
    %c0_i32_154 = arith.constant 0 : i32
    %c0_i32_155 = arith.constant 0 : i32
    %117 = tpu.memref_slice %arg2[%c3_i32_153, %c0_i32_154, %c0_i32_155] : memref<4x32x128xf32, #tpu.memory_space<any>> -> memref<1x8x128xf32, #tpu.memory_space<any>>
    %118 = tpu.memref_slice %arg3[%c12_i32_150] : memref<16x!tpu.dma_semaphore, #tpu.memory_space<semaphore_mem>> -> memref<1x!tpu.dma_semaphore, #tpu.memory_space<semaphore_mem>>
    %119 = tpu.memref_squeeze %118 : memref<1x!tpu.dma_semaphore, #tpu.memory_space<semaphore_mem>> -> memref<!tpu.dma_semaphore, #tpu.memory_space<semaphore_mem>>
    tpu.wait_dma2 semaphore(%119 : memref<!tpu.dma_semaphore, #tpu.memory_space<semaphore_mem>>) src(%116 : memref<1x8x128xf32, #tpu.memory_space<any>>) dst(%117 : memref<1x8x128xf32, #tpu.memory_space<any>>)
    %c13_i32_156 = arith.constant 13 : i32
    %c8_i32_157 = arith.constant 8 : i32
    %c0_i32_158 = arith.constant 0 : i32
    %120 = tpu.memref_slice %arg1[%3, %c8_i32_157, %c0_i32_158] : memref<4x32x128xf32, #tpu.memory_space<any>> -> memref<1x8x128xf32, #tpu.memory_space<any>>
    %c3_i32_159 = arith.constant 3 : i32
    %c8_i32_160 = arith.constant 8 : i32
    %c0_i32_161 = arith.constant 0 : i32
    %121 = tpu.memref_slice %arg2[%c3_i32_159, %c8_i32_160, %c0_i32_161] : memref<4x32x128xf32, #tpu.memory_space<any>> -> memref<1x8x128xf32, #tpu.memory_space<any>>
    %122 = tpu.memref_slice %arg3[%c13_i32_156] : memref<16x!tpu.dma_semaphore, #tpu.memory_space<semaphore_mem>> -> memref<1x!tpu.dma_semaphore, #tpu.memory_space<semaphore_mem>>
    %123 = tpu.memref_squeeze %122 : memref<1x!tpu.dma_semaphore, #tpu.memory_space<semaphore_mem>> -> memref<!tpu.dma_semaphore, #tpu.memory_space<semaphore_mem>>
    tpu.wait_dma2 semaphore(%123 : memref<!tpu.dma_semaphore, #tpu.memory_space<semaphore_mem>>) src(%120 : memref<1x8x128xf32, #tpu.memory_space<any>>) dst(%121 : memref<1x8x128xf32, #tpu.memory_space<any>>)
    %c14_i32_162 = arith.constant 14 : i32
    %c16_i32_163 = arith.constant 16 : i32
    %c0_i32_164 = arith.constant 0 : i32
    %124 = tpu.memref_slice %arg1[%3, %c16_i32_163, %c0_i32_164] : memref<4x32x128xf32, #tpu.memory_space<any>> -> memref<1x8x128xf32, #tpu.memory_space<any>>
    %c3_i32_165 = arith.constant 3 : i32
    %c16_i32_166 = arith.constant 16 : i32
    %c0_i32_167 = arith.constant 0 : i32
    %125 = tpu.memref_slice %arg2[%c3_i32_165, %c16_i32_166, %c0_i32_167] : memref<4x32x128xf32, #tpu.memory_space<any>> -> memref<1x8x128xf32, #tpu.memory_space<any>>
    %126 = tpu.memref_slice %arg3[%c14_i32_162] : memref<16x!tpu.dma_semaphore, #tpu.memory_space<semaphore_mem>> -> memref<1x!tpu.dma_semaphore, #tpu.memory_space<semaphore_mem>>
    %127 = tpu.memref_squeeze %126 : memref<1x!tpu.dma_semaphore, #tpu.memory_space<semaphore_mem>> -> memref<!tpu.dma_semaphore, #tpu.memory_space<semaphore_mem>>
    tpu.wait_dma2 semaphore(%127 : memref<!tpu.dma_semaphore, #tpu.memory_space<semaphore_mem>>) src(%124 : memref<1x8x128xf32, #tpu.memory_space<any>>) dst(%125 : memref<1x8x128xf32, #tpu.memory_space<any>>)
    %c15_i32_168 = arith.constant 15 : i32
    %c24_i32_169 = arith.constant 24 : i32
    %c0_i32_170 = arith.constant 0 : i32
    %128 = tpu.memref_slice %arg1[%3, %c24_i32_169, %c0_i32_170] : memref<4x32x128xf32, #tpu.memory_space<any>> -> memref<1x8x128xf32, #tpu.memory_space<any>>
    %c3_i32_171 = arith.constant 3 : i32
    %c24_i32_172 = arith.constant 24 : i32
    %c0_i32_173 = arith.constant 0 : i32
    %129 = tpu.memref_slice %arg2[%c3_i32_171, %c24_i32_172, %c0_i32_173] : memref<4x32x128xf32, #tpu.memory_space<any>> -> memref<1x8x128xf32, #tpu.memory_space<any>>
    %130 = tpu.memref_slice %arg3[%c15_i32_168] : memref<16x!tpu.dma_semaphore, #tpu.memory_space<semaphore_mem>> -> memref<1x!tpu.dma_semaphore, #tpu.memory_space<semaphore_mem>>
    %131 = tpu.memref_squeeze %130 : memref<1x!tpu.dma_semaphore, #tpu.memory_space<semaphore_mem>> -> memref<!tpu.dma_semaphore, #tpu.memory_space<semaphore_mem>>
    tpu.wait_dma2 semaphore(%131 : memref<!tpu.dma_semaphore, #tpu.memory_space<semaphore_mem>>) src(%128 : memref<1x8x128xf32, #tpu.memory_space<any>>) dst(%129 : memref<1x8x128xf32, #tpu.memory_space<any>>)
    return
  }
}

</mosaic_0001>

<bundles_post_ra>
// kernel: tpu_custom_call.1
= control target key start
LH: loop header
LB: loop body
LE: loop exit
PB: predicated region body
PF: predicated region fallthrough
CT: control target
= control target key end

     0   :  { %7 = vsyncpa [#allocation4], 0  ;;  %s800_s0 = inlined_call_operand.hbm [shape: s32[4], index: 0, kind: input, shape index: {}]   ;;  %s801_s1 = inlined_call_operand.hbm [shape: f32[4,32,128], index: 1, kind: input, shape index: {}]   ;;  %s802_s2 = inlined_call_operand.hbm [shape: f32[4,32,128], index: 2, kind: output, shape index: {}]  }
   0x1   :  { %s613_s11 = scalar_lea.hbm %s800_s0, 16 }
   0x2   :  { %p614_p0 = scmp.ne.s32.totalorder %s800_s0, %s613_s11  ;;  %p617_p1 = scmp.lt.u32.totalorder %s613_s11, %s800_s0 }
   0x4   :  { %p619_p2 = pnand %p617_p1, %p614_p0 }
   0x6   :  { %622 = shalt.err (!%p619_p2)
}
   0x7   :  { %s657_s16 = smov [#allocation3]  }
   0x8   :  { %15 = dma.hbm_to_smem %s800_s0, 16, %s657_s16, [#allocation4]  }
   0x9   :  { %623 = dma.done.wait [#allocation4], 16  }
   0xa   :  { %624 = vsyncadd [#allocation4], 4294967280 }
   0xb   :  { %19 = sfence }
   0xc   :  { %s20_s19 = sld [smem:[#allocation3]]  ;;  %s512_s20 = sld [smem:[#allocation3 + $0x1]] }
   0xd   :  { %s718_s21 = sld [smem:[#allocation3 + $0x2]]  ;;  %s720_s22 = sld [smem:[#allocation3 + $0x3]] }
   0xe   :  { %s43_s25 = scalar_lea.hbm %s802_s2, 128  ;;  %s61_s28 = scalar_lea.hbm %s802_s2, 256 }
   0xf   :  { %s79_s6 = scalar_lea.hbm %s802_s2, 384  ;;  %s658_s7 = smov [#allocation2]  }
  0x10   :  { %s659_s8 = smov [#allocation5]   ;;  %s660_s9 = smov 0  }
  0x11   :  { %s661_s14 = smov [#allocation2 + $0x1]   ;;  %s662_s15 = smov [#allocation7]  }
  0x12   :  { %s563_s29 = sshll.u32 %s20_s19, 9  ;;  %s663_s16 = smov [#allocation2 + $0x2]  }
  0x13   :  { %s26_s3 = scalar_lea.hbm %s801_s1, %s563_s29  ;;  %s664_s17 = smov [#allocation9]  }
  0x14   :  { %39 = dma.general %s26_s3, 128, %s802_s2, %s658_s7, %s659_s8, [#allocation6], %s660_s9, 0  }
  0x15   :  { %s461_s12 = scalar_lea.hbm %s26_s3, 128  ;;  %s465_s13 = scalar_lea.hbm %s26_s3, 256 }
  0x16   :  { %57 = dma.general %s461_s12, 128, %s43_s25, %s661_s14, %s662_s15, [#allocation8], %s660_s9, 0  }
  0x17   :  { %75 = dma.general %s465_s13, 128, %s61_s28, %s663_s16, %s664_s17, [#allocation10], %s660_s9, 0  }
  0x18   :  { %s469_s18 = scalar_lea.hbm %s26_s3, 384  ;;  %s567_s19 = sshll.u32 %s512_s20, 9 }
  0x19   :  { %s665_s23 = smov [#allocation2 + $0x3]   ;;  %s666_s24 = smov [#allocation11]  }
  0x1a   :  { %93 = dma.general %s469_s18, 128, %s79_s6, %s665_s23, %s666_s24, [#allocation12], %s660_s9, 0  }
  0x1b   :  { %s96_s29 = scalar_lea.hbm %s801_s1, %s567_s19  ;;  %s97_s4 = scalar_lea.hbm %s802_s2, 512 }
  0x1c   :  { %s667_s5 = smov [#allocation2 + $0x4]   ;;  %s668_s25 = smov [#allocation13]  }
  0x1d   :  { %111 = dma.general %s96_s29, 128, %s97_s4, %s667_s5, %s668_s25, [#allocation14], %s660_s9, 0  }
  0x1e   :  { %s475_s28 = scalar_lea.hbm %s96_s29, 128  ;;  %s115_s7 = scalar_lea.hbm %s802_s2, 640 }
  0x1f   :  { %s669_s8 = smov [#allocation2 + $0x5]   ;;  %s670_s6 = smov [#allocation15]  }
  0x20   :  { %129 = dma.general %s475_s28, 128, %s115_s7, %s669_s8, %s670_s6, [#allocation16], %s660_s9, 0  }
  0x21   :  { %s479_s10 = scalar_lea.hbm %s96_s29, 256  ;;  %s133_s13 = scalar_lea.hbm %s802_s2, 768 }
  0x22   :  { %s671_s14 = smov [#allocation2 + $0x6]   ;;  %s672_s15 = smov [#allocation17]  }
  0x23   :  { %147 = dma.general %s479_s10, 128, %s133_s13, %s671_s14, %s672_s15, [#allocation18], %s660_s9, 0  }
  0x24   :  { %s483_s16 = scalar_lea.hbm %s96_s29, 384  ;;  %s151_s19 = scalar_lea.hbm %s802_s2, 896 }
  0x25   :  { %s673_s23 = smov [#allocation2 + $0x7]   ;;  %s674_s24 = smov [#allocation19]  }
  0x26   :  { %165 = dma.general %s483_s16, 128, %s151_s19, %s673_s23, %s674_s24, [#allocation20], %s660_s9, 0  }
  0x27   :  { %s571_s26 = sshll.u32 %s718_s21, 9  ;;  %s169_s0 = scalar_lea.hbm %s802_s2, 1024 }
  0x28   :  { %s168_s25 = scalar_lea.hbm %s801_s1, %s571_s26  ;;  %s675_s29 = smov [#allocation2 + $0x8]  }
  0x29   :  { %s489_s28 = scalar_lea.hbm %s168_s25, 128  ;;  %s676_s3 = smov [#allocation21]  }
  0x2a   :  { %183 = dma.general %s168_s25, 128, %s169_s0, %s675_s29, %s676_s3, [#allocation22], %s660_s9, 0  }
  0x2b   :  { %s187_s8 = scalar_lea.hbm %s802_s2, 1152  ;;  %s493_s6 = scalar_lea.hbm %s168_s25, 256 }
  0x2c   :  { %s677_s21 = smov [#allocation2 + $0x9]   ;;  %s678_s10 = smov [#allocation23]  }
  0x2d   :  { %201 = dma.general %s489_s28, 128, %s187_s8, %s677_s21, %s678_s10, [#allocation24], %s660_s9, 0  }
  0x2e   :  { %s205_s13 = scalar_lea.hbm %s802_s2, 1280  ;;  %s497_s14 = scalar_lea.hbm %s168_s25, 384 }
  0x2f   :  { %s679_s15 = smov [#allocation2 + $0xa]   ;;  %s680_s16 = smov [#allocation25]  }
  0x30   :  { %219 = dma.general %s493_s6, 128, %s205_s13, %s679_s15, %s680_s16, [#allocation26], %s660_s9, 0  }
  0x31   :  { %s223_s19 = scalar_lea.hbm %s802_s2, 1408  ;;  %s575_s23 = sshll.u32 %s720_s22, 9 }
  0x32   :  { %s681_s24 = smov [#allocation2 + $0xb]   ;;  %s682_s26 = smov [#allocation27]  }
  0x33   :  { %237 = dma.general %s497_s14, 128, %s223_s19, %s681_s24, %s682_s26, [#allocation28], %s660_s9, 0  }
  0x34   :  { %s240_s0 = scalar_lea.hbm %s801_s1, %s575_s23  ;;  %s241_s25 = scalar_lea.hbm %s802_s2, 1536 }
  0x35   :  { %s683_s28 = smov [#allocation2 + $0xc]   ;;  %s684_s29 = smov [#allocation29]  }
  0x36   :  { %255 = dma.general %s240_s0, 128, %s241_s25, %s683_s28, %s684_s29, [#allocation30], %s660_s9, 0  }
  0x37   :  { %s503_s3 = scalar_lea.hbm %s240_s0, 128  ;;  %s259_s22 = scalar_lea.hbm %s802_s2, 1664 }
  0x38   :  { %s685_s8 = smov [#allocation2 + $0xd]   ;;  %s686_s6 = smov [#allocation31]  }
  0x39   :  { %273 = dma.general %s503_s3, 128, %s259_s22, %s685_s8, %s686_s6, [#allocation32], %s660_s9, 0  }
  0x3a   :  { %s507_s21 = scalar_lea.hbm %s240_s0, 256  ;;  %s277_s11 = scalar_lea.hbm %s802_s2, 1792 }
  0x3b   :  { %s687_s12 = smov [#allocation2 + $0xe]   ;;  %s688_s13 = smov [#allocation33]  }
  0x3c   :  { %291 = dma.general %s507_s21, 128, %s277_s11, %s687_s12, %s688_s13, [#allocation34], %s660_s9, 0  }
  0x3d   :  { %s511_s14 = scalar_lea.hbm %s240_s0, 384  ;;  %s295_s17 = scalar_lea.hbm %s802_s2, 1920 }
  0x3e   :  { %s689_s18 = smov [#allocation2 + $0xf]   ;;  %s690_s19 = smov [#allocation35]  }
  0x3f   :  { %309 = dma.general %s511_s14, 128, %s295_s17, %s689_s18, %s690_s19, [#allocation36], %s660_s9, 0  }
  0x40   :  { %625 = dma.done.wait [#allocation2], 128 }
  0x41   :  { %626 = vsyncadd [#allocation2], 4294967168 }
  0x42   :  { %627 = dma.done.wait [#allocation2 + $0x1], 128 }
  0x43   :  { %628 = vsyncadd [#allocation2 + $0x1], 4294967168 }
  0x44   :  { %629 = dma.done.wait [#allocation2 + $0x2], 128 }
  0x45   :  { %630 = vsyncadd [#allocation2 + $0x2], 4294967168 }
  0x46   :  { %631 = dma.done.wait [#allocation2 + $0x3], 128 }
  0x47   :  { %632 = vsyncadd [#allocation2 + $0x3], 4294967168 }
  0x48   :  { %633 = dma.done.wait [#allocation2 + $0x4], 128 }
  0x49   :  { %634 = vsyncadd [#allocation2 + $0x4], 4294967168 }
  0x4a   :  { %635 = dma.done.wait [#allocation2 + $0x5], 128 }
  0x4b   :  { %636 = vsyncadd [#allocation2 + $0x5], 4294967168 }
  0x4c   :  { %637 = dma.done.wait [#allocation2 + $0x6], 128 }
  0x4d   :  { %638 = vsyncadd [#allocation2 + $0x6], 4294967168 }
  0x4e   :  { %639 = dma.done.wait [#allocation2 + $0x7], 128 }
  0x4f   :  { %640 = vsyncadd [#allocation2 + $0x7], 4294967168 }
  0x50   :  { %641 = dma.done.wait [#allocation2 + $0x8], 128 }
  0x51   :  { %642 = vsyncadd [#allocation2 + $0x8], 4294967168 }
  0x52   :  { %643 = dma.done.wait [#allocation2 + $0x9], 128 }
  0x53   :  { %644 = vsyncadd [#allocation2 + $0x9], 4294967168 }
  0x54   :  { %645 = dma.done.wait [#allocation2 + $0xa], 128 }
  0x55   :  { %646 = vsyncadd [#allocation2 + $0xa], 4294967168 }
  0x56   :  { %647 = dma.done.wait [#allocation2 + $0xb], 128 }
  0x57   :  { %648 = vsyncadd [#allocation2 + $0xb], 4294967168 }
  0x58   :  { %649 = dma.done.wait [#allocation2 + $0xc], 128 }
  0x59   :  { %650 = vsyncadd [#allocation2 + $0xc], 4294967168 }
  0x5a   :  { %651 = dma.done.wait [#allocation2 + $0xd], 128 }
  0x5b   :  { %652 = vsyncadd [#allocation2 + $0xd], 4294967168 }
  0x5c   :  { %653 = dma.done.wait [#allocation2 + $0xe], 128 }
  0x5d   :  { %654 = vsyncadd [#allocation2 + $0xe], 4294967168 }
  0x5e   :  { %655 = dma.done.wait [#allocation2 + $0xf], 128 }
  0x5f   :  { %656 = vsyncadd [#allocation2 + $0xf], 4294967168 }
  0x60   :  { %344 = vsyncpa [#allocation4], 1 }
  0x61   :  { %345 = vsyncmov [#allocation2] }
  0x64   :  { %s346_s2 = vpop.sfrf %345 }
  0x65   :  { %p547_p3 = scmp.ne.s32.totalorder %s346_s2, 0 }
  0x67   :  { %350 = shalt.err (%p547_p3)  }
  0x68   :  { %352 = vsyncmov [#allocation2 + $0x1] }
  0x6b   :  { %s353_s9 = vpop.sfrf %352 }
  0x6c   :  { %p548_p4 = scmp.ne.s32.totalorder %s353_s9, 0 }
  0x6e   :  { %357 = shalt.err (%p548_p4)  }
  0x6f   :  { %359 = vsyncmov [#allocation2 + $0x2] }
  0x72   :  { %s360_s23 = vpop.sfrf %359 }
  0x73   :  { %p549_p5 = scmp.ne.s32.totalorder %s360_s23, 0 }
  0x75   :  { %364 = shalt.err (%p549_p5)  }
  0x76   :  { %366 = vsyncmov [#allocation2 + $0x3] }
  0x79   :  { %s367_s24 = vpop.sfrf %366 }
  0x7a   :  { %p550_p6 = scmp.ne.s32.totalorder %s367_s24, 0 }
  0x7c   :  { %371 = shalt.err (%p550_p6)  }
  0x7d   :  { %373 = vsyncmov [#allocation2 + $0x4] }
  0x80   :  { %s374_s26 = vpop.sfrf %373 }
  0x81   :  { %p551_p7 = scmp.ne.s32.totalorder %s374_s26, 0 }
  0x83   :  { %378 = shalt.err (%p551_p7)  }
  0x84   :  { %380 = vsyncmov [#allocation2 + $0x5] }
  0x87   :  { %s381_s27 = vpop.sfrf %380 }
  0x88   :  { %p552_p8 = scmp.ne.s32.totalorder %s381_s27, 0 }
  0x8a   :  { %385 = shalt.err (%p552_p8)  }
  0x8b   :  { %387 = vsyncmov [#allocation2 + $0x6] }
  0x8e   :  { %s388_s30 = vpop.sfrf %387 }
  0x8f   :  { %p553_p9 = scmp.ne.s32.totalorder %s388_s30, 0 }
  0x91   :  { %392 = shalt.err (%p553_p9)  }
  0x92   :  { %394 = vsyncmov [#allocation2 + $0x7] }
  0x95   :  { %s395_s0 = vpop.sfrf %394 }
  0x96   :  { %p554_p10 = scmp.ne.s32.totalorder %s395_s0, 0 }
  0x98   :  { %399 = shalt.err (%p554_p10)  }
  0x99   :  { %401 = vsyncmov [#allocation2 + $0x8] }
  0x9c   :  { %s402_s4 = vpop.sfrf %401 }
  0x9d   :  { %p555_p11 = scmp.ne.s32.totalorder %s402_s4, 0 }
  0x9f   :  { %406 = shalt.err (%p555_p11)  }
  0xa0   :  { %408 = vsyncmov [#allocation2 + $0x9] }
  0xa3   :  { %s409_s5 = vpop.sfrf %408 }
  0xa4   :  { %p556_p12 = scmp.ne.s32.totalorder %s409_s5, 0 }
  0xa6   :  { %413 = shalt.err (%p556_p12)  }
  0xa7   :  { %415 = vsyncmov [#allocation2 + $0xa] }
  0xaa   :  { %s416_s25 = vpop.sfrf %415 }
  0xab   :  { %p557_p13 = scmp.ne.s32.totalorder %s416_s25, 0 }
  0xad   :  { %420 = shalt.err (%p557_p13)  }
  0xae   :  { %422 = vsyncmov [#allocation2 + $0xb] }
  0xb1   :  { %s423_s28 = vpop.sfrf %422 }
  0xb2   :  { %p558_p0 = scmp.ne.s32.totalorder %s423_s28, 0 }
  0xb4   :  { %427 = shalt.err (%p558_p0)  }
  0xb5   :  { %429 = vsyncmov [#allocation2 + $0xc] }
  0xb8   :  { %s430_s29 = vpop.sfrf %429 }
  0xb9   :  { %p559_p1 = scmp.ne.s32.totalorder %s430_s29, 0 }
  0xbb   :  { %434 = shalt.err (%p559_p1)  }
  0xbc   :  { %436 = vsyncmov [#allocation2 + $0xd] }
  0xbf   :  { %s437_s3 = vpop.sfrf %436 }
  0xc0   :  { %p560_p2 = scmp.ne.s32.totalorder %s437_s3, 0 }
  0xc2   :  { %441 = shalt.err (%p560_p2)  }
  0xc3   :  { %443 = vsyncmov [#allocation2 + $0xe] }
  0xc6   :  { %s444_s20 = vpop.sfrf %443 }
  0xc7   :  { %p561_p3 = scmp.ne.s32.totalorder %s444_s20, 0 }
  0xc9   :  { %448 = shalt.err (%p561_p3)  }
  0xca   :  { %450 = vsyncmov [#allocation2 + $0xf] }
  0xcd   :  { %s451_s7 = vpop.sfrf %450 }
  0xce   :  { %p562_p4 = scmp.ne.s32.totalorder %s451_s7, 0 }
  0xd0   :  { %455 = shalt.err (%p562_p4)  }

</bundles_post_ra>
